<compile_context>
chip_gen: v7x
topology: tpu7x:2x2x1
jax: 0.10.0
libtpu: 0.0.40
codegen_flags: <defaults>
</compile_context>

<pallas_src>
import functools
import math

import jax
import jax.numpy as jnp
from jax.experimental import pallas as pl
from jax.experimental.pallas import tpu as pltpu

HIDDEN = 128      # architecture constant of the module (fc1/fc2 width)
LANE = 128
SUBLANE = 8
# Conservative budget for the double-buffered batch tiles so the kernel fits
# the default scoped VMEM on every generation without compiler-param tuning.
_TILE_VMEM_BUDGET = 12 * 1024 * 1024


def _round_up(x, m):
    return ((x + m - 1) // m) * m


def _dqn_kernel(x_ref, p_ref, o_ref, *, k8, hidden, compute_dtype):
    """Fused 3-layer MLP on one (TILE_B, k8) batch tile.

    p_ref packs (rows):
      [0, k8)                  : w1  (k8, 128)   zero-padded rows past stateSize
      [k8, k8+H)               : w2  (128, 128)
      [k8+H, k8+2H)            : w3  (128, 128)  zero-padded cols past actionSize
      [k8+2H, k8+2H+8)         : biases b1/b2/b3 in rows 0/1/2
    All slice offsets/sizes are multiples of 8 (sublane-aligned).
    """
    x = x_ref[...]                                           # (TILE_B, k8)
    w1 = p_ref[0:k8, :]
    w2 = p_ref[k8:k8 + hidden, :]
    w3 = p_ref[k8 + hidden:k8 + 2 * hidden, :]
    biases = p_ref[k8 + 2 * hidden:k8 + 2 * hidden + SUBLANE, :].astype(jnp.float32)
    b1 = biases[0:1, :]
    b2 = biases[1:2, :]
    b3 = biases[2:3, :]

    def mxu_dot(a, b):
        # Cast only at the matmul boundary; accumulate in f32 on the MXU.
        return jnp.dot(a.astype(compute_dtype), b.astype(compute_dtype),
                       preferred_element_type=jnp.float32)

    h1 = jnp.maximum(mxu_dot(x, w1) + b1, 0.0)               # fc1 + ReLU (f32 VPU)
    h2 = jnp.maximum(mxu_dot(h1, w2) + b2, 0.0)              # fc2 + ReLU
    o_ref[...] = (mxu_dot(h2, w3) + b3).astype(o_ref.dtype)  # fc3 (lane-dense)


def _choose_tile_b(batch, k8, x_itemsize):
    """Default tiling: two batch tiles (keeps both v7x TensorCores busy, only
    two grid steps of overhead on v5e/v6e), capped so double-buffered x + f32
    out tiles fit the conservative VMEM budget."""
    b8 = _round_up(max(batch, 1), SUBLANE)
    desired = _round_up(pl.cdiv(b8, 2), SUBLANE)
    bytes_per_row = 2 * (k8 * x_itemsize + LANE * 4)   # 2x = double buffering
    cap = max((_TILE_VMEM_BUDGET // bytes_per_row) // SUBLANE * SUBLANE, SUBLANE)
    return int(min(desired, cap))


@functools.partial(
    jax.jit,
    static_argnames=("state_size", "action_size", "tile_b", "compute_dtype"))
def dqn_forward(x, packed_params, state_size, action_size, *,
                tile_b=None, compute_dtype=jnp.float32):
    """x: (B, state_size). packed_params: output of pack_dqn_params."""
    B = x.shape[0]
    hidden = HIDDEN
    k8 = _round_up(max(state_size, 1), SUBLANE)
    p_rows = k8 + 2 * hidden + SUBLANE
    assert packed_params.shape == (p_rows, LANE), packed_params.shape

    x_itemsize = jnp.dtype(compute_dtype).itemsize
    if tile_b is None:
        tile_b = _choose_tile_b(B, k8, x_itemsize)
    tile_b = max(_round_up(tile_b, SUBLANE), SUBLANE)
    b_pad = _round_up(max(B, 1), tile_b)
    grid_b = b_pad // tile_b

    # Minimal padding only (batch to the tile, K to a sublane multiple).
    # This pad, the kernel, and the strip-slice below all fuse under this jit.
    x_p = jnp.pad(x.astype(compute_dtype),
                  ((0, b_pad - B), (0, k8 - state_size)))

    flops = 2 * B * (state_size * hidden + hidden * hidden + hidden * action_size)
    bytes_accessed = (x_itemsize * b_pad * k8
                      + packed_params.dtype.itemsize * p_rows * LANE
                      + 4 * b_pad * LANE)
    cost = pl.CostEstimate(flops=flops, transcendentals=0,
                           bytes_accessed=bytes_accessed)

    kernel = functools.partial(_dqn_kernel, k8=k8, hidden=hidden,
                               compute_dtype=compute_dtype)

    out = pl.pallas_call(
        kernel,
        out_shape=jax.ShapeDtypeStruct((b_pad, LANE), jnp.float32),
        grid=(grid_b,),
        in_specs=[
            pl.BlockSpec((tile_b, k8), lambda i: (i, 0)),      # batch tile of x
            pl.BlockSpec((p_rows, LANE), lambda i: (0, 0)),    # weights resident
        ],
        out_specs=pl.BlockSpec((tile_b, LANE), lambda i: (i, 0)),
        compiler_params=pltpu.CompilerParams(
            dimension_semantics=("parallel",)),
        cost_estimate=cost,
    )(x_p, packed_params)

    # Padded output lanes are exactly zero (zero-padded w3/b3): keep this slice
    # so an argmax consumer never sees them. It fuses with the kernel under jit.
    return out[:B, :action_size]


def init_linear_params(key, in_features, out_features):
    """PyTorch nn.Linear default init: U(-1/sqrt(in), 1/sqrt(in))."""
    kw, kb = jax.random.split(key)
    bound = 1.0 / math.sqrt(in_features)
    # Stored as (in, out) so forward is x @ W (== PyTorch x @ W.T with (out,in)).
    w = jax.random.uniform(kw, (in_features, out_features), jnp.float32,
                           minval=-bound, maxval=bound)
    b = jax.random.uniform(kb, (out_features,), jnp.float32,
                           minval=-bound, maxval=bound)
    return w, b


def init_dqn_params(key, state_size, action_size, hidden=HIDDEN):
    k1, k2, k3 = jax.random.split(key, 3)
    w1, b1 = init_linear_params(k1, state_size, hidden)
    w2, b2 = init_linear_params(k2, hidden, hidden)
    w3, b3 = init_linear_params(k3, hidden, action_size)
    return (w1, b1, w2, b2, w3, b3)


def pack_dqn_params(params, state_size, action_size, hidden=HIDDEN,
                    dtype=jnp.float32):
    """Pack all weights/biases into one (K8 + 2H + 8, 128) buffer.

    fc1's contraction dim is only rounded to a sublane multiple (8), fc3's
    output dim is zero-padded to 128 so the kernel stores lane-dense tiles.
    Pass dtype=jnp.bfloat16 to halve weight DMA bytes (use with
    compute_dtype=jnp.bfloat16 in dqn_forward).
    """
    assert hidden == LANE, "module architecture fixes the hidden width to 128"
    assert action_size <= LANE, "actionSize must fit in one 128-lane tile"
    w1, b1, w2, b2, w3, b3 = params
    k8 = _round_up(max(state_size, 1), SUBLANE)
    p_rows = k8 + 2 * hidden + SUBLANE

    packed = jnp.zeros((p_rows, LANE), jnp.float32)
    packed = packed.at[:state_size, :hidden].set(w1)
    packed = packed.at[k8:k8 + hidden, :hidden].set(w2)
    packed = packed.at[k8 + hidden:k8 + 2 * hidden, :action_size].set(w3)
    r = k8 + 2 * hidden
    packed = packed.at[r + 0, :hidden].set(b1.reshape(-1))
    packed = packed.at[r + 1, :hidden].set(b2.reshape(-1))
    packed = packed.at[r + 2, :action_size].set(b3.reshape(-1))
    return packed.astype(dtype)


def dqn_reference(x, params):
    """Plain-JAX reference for correctness checking."""
    w1, b1, w2, b2, w3, b3 = params
    h1 = jnp.maximum(x @ w1 + b1, 0.0)
    h2 = jnp.maximum(h1 @ w2 + b2, 0.0)
    return h2 @ w3 + b3


if __name__ == "__main__":
    key = jax.random.PRNGKey(0)
    k_params, k_x = jax.random.split(key)

    batch = 256          # -> two 128-row batch tiles (exercises the grid / v7x path)
    state_size = 16
    action_size = 4

    params = init_dqn_params(k_params, state_size, action_size)
    x = jax.random.normal(k_x, (batch, state_size), dtype=jnp.float32)
    ref = dqn_reference(x, params)

    # Exact (f32) path.
    packed_f32 = pack_dqn_params(params, state_size, action_size)
    out = dqn_forward(x, packed_f32, state_size, action_size)
    out = jax.block_until_ready(out)
    assert out.shape == (batch, action_size), out.shape
    assert jnp.allclose(out, ref, atol=1e-4, rtol=1e-4), "f32 mismatch vs reference"

    # Fast (bf16 storage/MXU, f32 accumulate) path — relaxed tolerance.
    packed_bf16 = pack_dqn_params(params, state_size, action_size,
                                  dtype=jnp.bfloat16)
    out_bf16 = dqn_forward(x, packed_bf16, state_size, action_size,
                           compute_dtype=jnp.bfloat16)
    out_bf16 = jax.block_until_ready(out_bf16)
    assert out_bf16.shape == (batch, action_size), out_bf16.shape
    assert jnp.allclose(out_bf16, ref, atol=5e-2, rtol=5e-2), "bf16 mismatch vs reference"

    print("KERNEL_OK")
</pallas_src>

<mosaic_0001>
module attributes {stable_mosaic.version = 11 : i64} {
  func.func @_dqn_kernel(%arg0: i32, %arg1: memref<128x16xf32, #tpu.memory_space<vmem>>, %arg2: memref<280x128xf32, #tpu.memory_space<vmem>>, %arg3: memref<128x128xf32, #tpu.memory_space<vmem>>) attributes {dimension_semantics = [#tpu.dimension_semantics<parallel>], iteration_bounds = array<i64: 2>, scalar_prefetch = 0 : i64, scratch_operands = 0 : i64, tpu.core_type = #tpu.core_type<tc>, window_params = [{transform_indices = @transform_0, window_bounds = array<i64: 128, 16>}, {pipeline_mode = #tpu.pipeline_mode<synchronous>, transform_indices = @transform_1, window_bounds = array<i64: 280, 128>}, {transform_indices = @transform_2, window_bounds = array<i64: 128, 128>}]} {
    %c0 = arith.constant 0 : index
    %c0_0 = arith.constant 0 : index
    %0 = vector.load %arg1[%c0, %c0_0] : memref<128x16xf32, #tpu.memory_space<vmem>>, vector<128x16xf32>
    %c0_1 = arith.constant 0 : index
    %c0_2 = arith.constant 0 : index
    %1 = vector.load %arg2[%c0_1, %c0_2] : memref<280x128xf32, #tpu.memory_space<vmem>>, vector<16x128xf32>
    %c16 = arith.constant 16 : index
    %c0_3 = arith.constant 0 : index
    %2 = vector.load %arg2[%c16, %c0_3] : memref<280x128xf32, #tpu.memory_space<vmem>>, vector<128x128xf32>
    %c144 = arith.constant 144 : index
    %c0_4 = arith.constant 0 : index
    %3 = vector.load %arg2[%c144, %c0_4] : memref<280x128xf32, #tpu.memory_space<vmem>>, vector<128x128xf32>
    %c272 = arith.constant 272 : index
    %c0_5 = arith.constant 0 : index
    %4 = vector.load %arg2[%c272, %c0_5] : memref<280x128xf32, #tpu.memory_space<vmem>>, vector<8x128xf32>
    %5 = vector.extract_strided_slice %4 {offsets = [0, 0], sizes = [1, 128], strides = [1, 1]} : vector<8x128xf32> to vector<1x128xf32>
    %6 = vector.extract_strided_slice %4 {offsets = [1, 0], sizes = [1, 128], strides = [1, 1]} : vector<8x128xf32> to vector<1x128xf32>
    %7 = vector.extract_strided_slice %4 {offsets = [2, 0], sizes = [1, 128], strides = [1, 1]} : vector<8x128xf32> to vector<1x128xf32>
    %cst = arith.constant dense<0.000000e+00> : vector<128x128xf32>
    %8 = tpu.matmul %0, %1, %cst {dimension_numbers = #tpu.dot_dimension_numbers<[1], [0], [0], [1], [0, 0, 1, 1], [], []>} : vector<128x16xf32>, vector<16x128xf32>, vector<128x128xf32> -> vector<128x128xf32>
    %9 = vector.broadcast %5 : vector<1x128xf32> to vector<128x128xf32>
    %10 = arith.addf %8, %9 : vector<128x128xf32>
    %cst_6 = arith.constant 0.000000e+00 : f32
    %11 = vector.broadcast %cst_6 : f32 to vector<128x128xf32>
    %12 = arith.maximumf %10, %11 : vector<128x128xf32>
    %cst_7 = arith.constant dense<0.000000e+00> : vector<128x128xf32>
    %13 = tpu.matmul %12, %2, %cst_7 {dimension_numbers = #tpu.dot_dimension_numbers<[1], [0], [0], [1], [0, 0, 1, 1], [], []>} : vector<128x128xf32>, vector<128x128xf32>, vector<128x128xf32> -> vector<128x128xf32>
    %14 = vector.broadcast %6 : vector<1x128xf32> to vector<128x128xf32>
    %15 = arith.addf %13, %14 : vector<128x128xf32>
    %cst_8 = arith.constant 0.000000e+00 : f32
    %16 = vector.broadcast %cst_8 : f32 to vector<128x128xf32>
    %17 = arith.maximumf %15, %16 : vector<128x128xf32>
    %cst_9 = arith.constant dense<0.000000e+00> : vector<128x128xf32>
    %18 = tpu.matmul %17, %3, %cst_9 {dimension_numbers = #tpu.dot_dimension_numbers<[1], [0], [0], [1], [0, 0, 1, 1], [], []>} : vector<128x128xf32>, vector<128x128xf32>, vector<128x128xf32> -> vector<128x128xf32>
    %19 = vector.broadcast %7 : vector<1x128xf32> to vector<128x128xf32>
    %20 = arith.addf %18, %19 : vector<128x128xf32>
    %c0_10 = arith.constant 0 : index
    %c0_11 = arith.constant 0 : index
    %21 = vector.load %arg3[%c0_10, %c0_11] : memref<128x128xf32, #tpu.memory_space<vmem>>, vector<128x128xf32>
    tpu.vector_store %arg3[%c0_10, %c0_11], %20 {strides = array<i32>} : memref<128x128xf32, #tpu.memory_space<vmem>>, vector<128x128xf32>,
    return
  }
  func.func @transform_0(%arg0: i32) -> (i32, i32) {
    %c0_i32 = arith.constant 0 : i32
    %c0_i32_0 = arith.constant 0 : i32
    return %arg0, %c0_i32 : i32, i32
  }
  func.func @transform_1(%arg0: i32) -> (i32, i32) {
    %c0_i32 = arith.constant 0 : i32
    %c0_i32_0 = arith.constant 0 : i32
    %c0_i32_1 = arith.constant 0 : i32
    return %c0_i32, %c0_i32_0 : i32, i32
  }
  func.func @transform_2(%arg0: i32) -> (i32, i32) {
    %c0_i32 = arith.constant 0 : i32
    %c0_i32_0 = arith.constant 0 : i32
    return %arg0, %c0_i32 : i32, i32
  }
}

</mosaic_0001>

<bundles_post_ra>
// kernel: dqn_forward.1
= control target key start
LH: loop header
LB: loop body
LE: loop exit
PB: predicated region body
PF: predicated region fallthrough
CT: control target
= control target key end

     0   :  { %s1146_s9 = smov 0   ;;  %s1337_s0 = inlined_call_operand.vmem [shape: f32[256,16], index: 0, kind: input, shape index: {}]   ;;  %s1338_s1 = inlined_call_operand.vmem [shape: f32[280,128], index: 1, kind: input, shape index: {}]   ;;  %s1339_s2 = inlined_call_operand.vmem [shape: f32[256,128], index: 2, kind: output, shape index: {}]  }
   0x1 LB: > { %s798_s10 = sadd.s32 4294967295, %s1129_s9   ;;  %p802_p0 = scmp.ge.s32.totalorder %s1129_s9, 1  ;;  %s1129_s9 = sphi %s1146_s9, %s12_s9  }
   0x2   : > { %p113_p1 = scmp.lt.s32.totalorder %s1129_s9, 3 }
   0x4   : > { %p114_p2 = pnand %p802_p0, %p113_p1 }
   0x5   : > { %v163_v0 = vld [vmem:[%s1338_s1] sm:$0xff] (!%p114_p2)  ;;  %v164_v1 = vld [vmem:[%s1338_s1 + $0x8] sm:$0xff] (!%p114_p2)  ;;  %s803_s15 = sshll.u32 (!%p114_p2), %s798_s10, 4  ;;  %v165_v2 = vld [vmem:[%s1338_s1 + $0x10] sm:$0xff] (!%p114_p2)  ;;  %vm202_vm0 = vcmask (!%p114_p2), 130048  }
   0x6   : > { %117 = sbr.rel (%p114_p2) target bundleno = 698 (0x2ba), region = 28  ;;  %v1047_v3 = vpack.c.bf16 (!%p114_p2), %v164_v1, %v163_v0  ;;  %p136_p3 = scmp.lt.s32.totalorder (!%p114_p2), %s803_s15, 31  ;;  %v166_v4 = vld [vmem:[%s1338_s1 + $0x18] sm:$0xff] (!%p114_p2)  ;;  %v167_v5 = vld [vmem:[%s1338_s1 + $0x20] sm:$0xff] (!%p114_p2)  ;;  %v168_v6 = vld [vmem:[%s1338_s1 + $0x28] sm:$0xff] (!%p114_p2)  ;;  %v198_v0 = vlaneseq (!%p114_p2) }
   0x7   : > { %v1051_v7 = vpack.c.bf16 (!%p114_p2), %v166_v4, %v165_v2  ;;  %v1055_v8 = vpack.c.bf16 (!%p114_p2), %v168_v6, %v167_v5  ;;  %v169_v9 = vld [vmem:[%s1338_s1 + $0x30] sm:$0xff] (!%p114_p2)  ;;  %v170_v10 = vld [vmem:[%s1338_s1 + $0x38] sm:$0xff] (!%p114_p2)  ;;  %v171_v12 = vld [vmem:[%s1338_s1 + $0x40] sm:$0xff] (!%p114_p2) }
   0x8   : > { %1048 = vmatprep.subr.bf16.mxu0 (!%p114_p2), %v1047_v3  ;;  %v1059_v11 = vpack.c.bf16 (!%p114_p2), %v170_v10, %v169_v9  ;;  %v172_v13 = vld [vmem:[%s1338_s1 + $0x48] sm:$0xff] (!%p114_p2)  ;;  %v173_v20 = vld [vmem:[%s1338_s1 + $0x50] sm:$0xff] (!%p114_p2)  ;;  %v174_v21 = vld [vmem:[%s1338_s1 + $0x58] sm:$0xff] (!%p114_p2)  ;;  %v1292_v1 = vshrl.u32 (!%p114_p2), %v198_v0, 7 }
   0x9   : > { %1050 = vmatpush3.bf16.msra.mxu0 (!%p114_p2), %v1047_v3  ;;  %1052 = vmatprep.subr.bf16.mxu1 (!%p114_p2), %v1051_v7  ;;  %v1063_v18 = vpack.c.bf16 (!%p114_p2), %v172_v13, %v171_v12  ;;  %v1067_v23 = vpack.c.bf16 (!%p114_p2), %v174_v21, %v173_v20  ;;  %v175_v25 = vld [vmem:[%s1338_s1 + $0x60] sm:$0xff] (!%p114_p2)  ;;  %v176_v26 = vld [vmem:[%s1338_s1 + $0x68] sm:$0xff] (!%p114_p2)  ;;  %v177_v30 = vld [vmem:[%s1338_s1 + $0x70] sm:$0xff] (!%p114_p2) }
   0xa   : > { %1054 = vmatpush3.bf16.msra.mxu1 (!%p114_p2), %v1051_v7  ;;  %v1071_v28 = vpack.c.bf16 (!%p114_p2), %v176_v26, %v175_v25  ;;  %v178_v31 = vld [vmem:[%s1338_s1 + $0x78] sm:$0xff] (!%p114_p2)  ;;  %v179_v40 = vld [vmem:[%s1338_s1 + $0x80] sm:$0xff] (!%p114_p2)  ;;  %v180_v41 = vld [vmem:[%s1338_s1 + $0x88] sm:$0xff] (!%p114_p2)  ;;  %v200_v2 = vsub.s32 (!%p114_p2), 0, %v1292_v1 }
   0xb   : > { %1056 = vmatprep.subr.bf16.mxu1 (!%p114_p2), %v1055_v8  ;;  %v1075_v33 = vpack.c.bf16 (!%p114_p2), %v178_v31, %v177_v30  ;;  %v1079_v42 = vpack.c.bf16 (!%p114_p2), %v180_v41, %v179_v40  ;;  %v181_v43 = vld [vmem:[%s1338_s1 + $0x90] sm:$0xff] (!%p114_p2)  ;;  %v182_v44 = vld [vmem:[%s1338_s1 + $0x98] sm:$0xff] (!%p114_p2)  ;;  %v183_v45 = vld [vmem:[%s1338_s1 + $0xa0] sm:$0xff] (!%p114_p2) }
   0xc   : > { %v1083_v46 = vpack.c.bf16 (!%p114_p2), %v182_v44, %v181_v43  ;;  %v184_v47 = vld [vmem:[%s1338_s1 + $0xa8] sm:$0xff] (!%p114_p2)  ;;  %v185_v49 = vld [vmem:[%s1338_s1 + $0xb0] sm:$0xff] (!%p114_p2)  ;;  %v186_v50 = vld [vmem:[%s1338_s1 + $0xb8] sm:$0xff] (!%p114_p2) }
   0xd   : > { %s1341_s15 = smov (!%p136_p3, %s803_s15), 31  ;;  %v1087_v48 = vpack.c.bf16 %v184_v47, %v183_v45  ;;  %v1091_v51 = vpack.c.bf16 %v186_v50, %v185_v49  ;;  %v187_v52 = vld [vmem:[%s1338_s1 + $0xc0] sm:$0xff]  ;;  %v188_v53 = vld [vmem:[%s1338_s1 + $0xc8] sm:$0xff]  ;;  %v189_v55 = vld [vmem:[%s1338_s1 + $0xd0] sm:$0xff] }
   0xe   : > { %s804_s28 = sshll.u32 %s1341_s15, 3  ;;  %1058 = vmatpush3.bf16.msra.mxu1 %v1055_v8  ;;  %1084 = vmatprep.subr.bf16.mxu0 %v1083_v46  ;;  %v1095_v54 = vpack.c.bf16 %v188_v53, %v187_v52  ;;  %v190_v56 = vld [vmem:[%s1338_s1 + $0xd8] sm:$0xff]  ;;  %v191_v58 = vld [vmem:[%s1338_s1 + $0xe0] sm:$0xff]  ;;  %v192_v59 = vld [vmem:[%s1338_s1 + $0xe8] sm:$0xff] }
   0xf   : > { %s1186_s3 = scalar_lea.vmem %s1337_s0, %s804_s28  ;;  %1060 = vmatprep.subr.bf16.mxu1 %v1059_v11  ;;  %v1099_v57 = vpack.c.bf16 %v190_v56, %v189_v55  ;;  %v1103_v60 = vpack.c.bf16 %v192_v59, %v191_v58  ;;  %v193_v61 = vld [vmem:[%s1338_s1 + $0xf0] sm:$0xff]  ;;  %v194_v62 = vld [vmem:[%s1338_s1 + $0xf8] sm:$0xff]  ;;  %v195_v53 = vld [vmem:[%s1338_s1 + $0x100] sm:$0xff]  ;;  %v414_v56 = vsub.s32 1, %v1292_v1  ;;  %s1316_s11 = scalar_lea.vmem %s1339_s2, %s804_s28 }
  0x10   : > { %v147_v14 = vld [vmem:[%s1186_s3] sm:$0xff]  ;;  %v148_v15 = vld [vmem:[%s1186_s3 + $0x8] sm:$0xff]  ;;  %v149_v16 = vld [vmem:[%s1186_s3 + $0x10] sm:$0xff]  ;;  %v1107_v63 = vpack.c.bf16 %v194_v62, %v193_v61 }
  0x11   : > { %911 = vmatprep.mubr.msk.f32.mxu0 %vm202_vm0, %v147_v14  ;;  %v150_v17 = vld [vmem:[%s1186_s3 + $0x18] sm:$0xff]  ;;  %v151_v19 = vld [vmem:[%s1186_s3 + $0x20] sm:$0xff]  ;;  %v152_v22 = vld [vmem:[%s1186_s3 + $0x28] sm:$0xff] }
  0x12   : > { %912 = vmatmul.mubr.msk.f32.vlgmr.msra.gmra.mrb[0].mxu0 %vm202_vm0, %v148_v15  ;;  %1062 = vmatpush3.bf16.msra.mxu1 %v1059_v11  ;;  %v153_v24 = vld [vmem:[%s1186_s3 + $0x30] sm:$0xff]  ;;  %v154_v27 = vld [vmem:[%s1186_s3 + $0x38] sm:$0xff]  ;;  %v155_v29 = vld [vmem:[%s1186_s3 + $0x40] sm:$0xff] }
  0x13   : > { %914 = vmatprep.mubr.msk.f32.mxu0 %vm202_vm0, %v149_v16  ;;  %1064 = vmatprep.subr.bf16.mxu1 %v1063_v18  ;;  %v156_v32 = vld [vmem:[%s1186_s3 + $0x48] sm:$0xff]  ;;  %v157_v34 = vld [vmem:[%s1186_s3 + $0x50] sm:$0xff]  ;;  %v158_v35 = vld [vmem:[%s1186_s3 + $0x58] sm:$0xff] }
  0x14   : > { %v159_v36 = vld [vmem:[%s1186_s3 + $0x60] sm:$0xff]  ;;  %v160_v37 = vld [vmem:[%s1186_s3 + $0x68] sm:$0xff]  ;;  %v161_v38 = vld [vmem:[%s1186_s3 + $0x70] sm:$0xff]  ;;  %1086 = vmatpush3.bf16.msra.mxu0 %v1083_v46 }
  0x15   : > { %v162_v39 = vld [vmem:[%s1186_s3 + $0x78] sm:$0xff]  ;;  %1088 = vmatprep.subr.bf16.mxu0 %v1087_v48  ;;  %v1298_v3 = vld [vmem:[%s1338_s1 + $0x110] sm:$0xff] }
  0x16   : > { %915 = vmatmul.mubr.msk.f32.gmra.mrb[2].mxu0 %vm202_vm0, %v150_v17  ;;  %1066 = vmatpush3.bf16.msra.mxu1 %v1063_v18  ;;  %v201_v4 = vrot.slane %v1298_v3, %v200_v2 }
  0x17   : > { %917 = vmatprep.mubr.msk.f32.mxu0 %vm202_vm0, %v151_v19  ;;  %1068 = vmatprep.subr.bf16.mxu1 %v1067_v23 }
  0x18   : > { %1090 = vmatpush3.bf16.msra.mxu0 %v1087_v48 }
  0x19   : > { %1092 = vmatprep.subr.bf16.mxu0 %v1091_v51 }
  0x1a   : > { %918 = vmatmul.mubr.msk.f32.gmra.mrb[4].mxu0 %vm202_vm0, %v152_v22  ;;  %1070 = vmatpush3.bf16.msra.mxu1 %v1067_v23 }
  0x1b   : > { %920 = vmatprep.mubr.msk.f32.mxu0 %vm202_vm0, %v153_v24  ;;  %1072 = vmatprep.subr.bf16.mxu1 %v1071_v28 }
  0x1c   : > { %1094 = vmatpush3.bf16.msra.mxu0 %v1091_v51 }
  0x1d   : > { %1096 = vmatprep.subr.bf16.mxu0 %v1095_v54 }
  0x1e   : > { %921 = vmatmul.mubr.msk.f32.gmra.mrb[6].mxu0 %vm202_vm0, %v154_v27  ;;  %1074 = vmatpush3.bf16.msra.mxu1 %v1071_v28 }
  0x1f   : > { %923 = vmatprep.mubr.msk.f32.mxu0 %vm202_vm0, %v155_v29  ;;  %1076 = vmatprep.subr.bf16.mxu1 %v1075_v33 }
  0x20   : > { %1098 = vmatpush3.bf16.msra.mxu0 %v1095_v54  ;;  %v196_v54 = vld [vmem:[%s1338_s1 + $0x108] sm:$0xff] }
  0x21   : > { %1100 = vmatprep.subr.bf16.mxu0 %v1099_v57  ;;  %v1111_v55 = vpack.c.bf16 %v196_v54, %v195_v53 }
  0x22   : > { %924 = vmatmul.mubr.msk.f32.gmra.mrb[8].mxu0 %vm202_vm0, %v156_v32  ;;  %1078 = vmatpush3.bf16.msra.mxu1 %v1075_v33 }
  0x23   : > { %926 = vmatprep.mubr.msk.f32.mxu0 %vm202_vm0, %v157_v34  ;;  %1080 = vmatprep.subr.bf16.mxu1 %v1079_v42 }
  0x24   : > { %1102 = vmatpush3.bf16.msra.mxu0 %v1099_v57  ;;  %v415_v57 = vrot.slane %v1298_v3, %v414_v56 }
  0x25   : > { %1104 = vmatprep.subr.bf16.mxu0 %v1103_v60 }
  0x26   : > { %927 = vmatmul.mubr.msk.f32.gmra.mrb[10].mxu0 %vm202_vm0, %v158_v35  ;;  %1082 = vmatpush3.bf16.msra.mxu1 %v1079_v42 }
  0x27   : > { %929 = vmatprep.mubr.msk.f32.mxu0 %vm202_vm0, %v159_v36 }
  0x28   : > { %1106 = vmatpush3.bf16.msra.mxu0 %v1103_v60 }
  0x29   : > { %1108 = vmatprep.subr.bf16.mxu0 %v1107_v63 }
  0x2a   : > { %930 = vmatmul.mubr.msk.f32.gmra.mrb[12].mxu0 %vm202_vm0, %v160_v37 }
  0x2b   : > { %932 = vmatprep.mubr.msk.f32.mxu0 %vm202_vm0, %v161_v38 }
  0x2c   : > { %1110 = vmatpush3.bf16.msra.mxu0 %v1107_v63 }
  0x2d   : > { %1112 = vmatprep.subr.bf16.mxu0 %v1111_v55 }
  0x2e   : > { %933 = vmatmul.mubr.msk.f32.gmra.mrb[14].mxu0 %vm202_vm0, %v162_v39 }
  0x30   : > { %1114 = vmatpush3.bf16.msra.mxu0 %v1111_v55 }
  0xe5   : > { %v913_v5 = vpop.f32.mrb[0].mxu0 }
  0xe6   : > { %v323_v6 = vadd.f32 %v913_v5, %v201_v4  ;;  %v317_v7 = vpop.f32.mrb[1].mxu0 }
  0xe7   : > { %v318_v8 = vadd.f32 %v317_v7, %v201_v4 }
  0xe8   : > { %v397_v11 = vmax.f32 %v323_v6, 0.0 }
  0xe9   : > { %v916_v9 = vpop.f32.mrb[2].mxu0  ;;  %v396_v10 = vmax.f32 %v318_v8, 0.0 }
  0xea   : > { %v333_v12 = vadd.f32 %v916_v9, %v201_v4  ;;  %v327_v13 = vpop.f32.mrb[3].mxu0 }
  0xeb   : > { %v328_v14 = vadd.f32 %v327_v13, %v201_v4  ;;  %967 = vmatprep.mubr.f32.mxu1 %v396_v10 }
  0xec   : > { %968 = vmatmul.mubr.f32.vlgmr.msra.gmra.mrb[0].mxu1 %v397_v11  ;;  %v399_v17 = vmax.f32 %v333_v12, 0.0 }
  0xed   : > { %v398_v15 = vmax.f32 %v328_v14, 0.0  ;;  %v919_v16 = vpop.f32.mrb[4].mxu0 }
  0xee   : > { %v343_v18 = vadd.f32 %v919_v16, %v201_v4  ;;  %v337_v19 = vpop.f32.mrb[5].mxu0 }
  0xef   : > { %v338_v20 = vadd.f32 %v337_v19, %v201_v4  ;;  %970 = vmatprep.mubr.f32.mxu1 %v398_v15 }
  0xf0   : > { %971 = vmatmul.mubr.f32.gmra.mrb[2].mxu1 %v399_v17  ;;  %v401_v23 = vmax.f32 %v343_v18, 0.0 }
  0xf1   : > { %v400_v21 = vmax.f32 %v338_v20, 0.0  ;;  %v922_v22 = vpop.f32.mrb[6].mxu0 }
  0xf2   : > { %v353_v24 = vadd.f32 %v922_v22, %v201_v4  ;;  %v347_v25 = vpop.f32.mrb[7].mxu0 }
  0xf3   : > { %v348_v26 = vadd.f32 %v347_v25, %v201_v4  ;;  %973 = vmatprep.mubr.f32.mxu1 %v400_v21 }
  0xf4   : > { %974 = vmatmul.mubr.f32.gmra.mrb[4].mxu1 %v401_v23  ;;  %v403_v29 = vmax.f32 %v353_v24, 0.0 }
  0xf5   : > { %v402_v27 = vmax.f32 %v348_v26, 0.0  ;;  %v925_v28 = vpop.f32.mrb[8].mxu0 }
  0xf6   : > { %v363_v30 = vadd.f32 %v925_v28, %v201_v4  ;;  %v357_v31 = vpop.f32.mrb[9].mxu0 }
  0xf7   : > { %v358_v32 = vadd.f32 %v357_v31, %v201_v4  ;;  %976 = vmatprep.mubr.f32.mxu1 %v402_v27 }
  0xf8   : > { %977 = vmatmul.mubr.f32.gmra.mrb[6].mxu1 %v403_v29  ;;  %v405_v35 = vmax.f32 %v363_v30, 0.0 }
  0xf9   : > { %v404_v33 = vmax.f32 %v358_v32, 0.0  ;;  %v928_v34 = vpop.f32.mrb[10].mxu0 }
  0xfa   : > { %v373_v36 = vadd.f32 %v928_v34, %v201_v4  ;;  %v367_v37 = vpop.f32.mrb[11].mxu0 }
  0xfb   : > { %v368_v38 = vadd.f32 %v367_v37, %v201_v4  ;;  %979 = vmatprep.mubr.f32.mxu1 %v404_v33 }
  0xfc   : > { %980 = vmatmul.mubr.f32.gmra.mrb[8].mxu1 %v405_v35  ;;  %v407_v41 = vmax.f32 %v373_v36, 0.0 }
  0xfd   : > { %v406_v39 = vmax.f32 %v368_v38, 0.0  ;;  %v931_v40 = vpop.f32.mrb[12].mxu0 }
  0xfe   : > { %v383_v42 = vadd.f32 %v931_v40, %v201_v4  ;;  %v377_v43 = vpop.f32.mrb[13].mxu0 }
  0xff   : > { %v378_v44 = vadd.f32 %v377_v43, %v201_v4  ;;  %982 = vmatprep.mubr.f32.mxu1 %v406_v39 }
 0x100   : > { %983 = vmatmul.mubr.f32.gmra.mrb[10].mxu1 %v407_v41  ;;  %v409_v47 = vmax.f32 %v383_v42, 0.0 }
 0x101   : > { %v408_v45 = vmax.f32 %v378_v44, 0.0  ;;  %v934_v46 = vpop.f32.mrb[14].mxu0  ;;  %v579_v44 = vsub.s32 2, %v1292_v1 }
 0x102   : > { %v393_v48 = vadd.f32 %v934_v46, %v201_v4  ;;  %v387_v49 = vpop.f32.mrb[15].mxu0 }
 0x103   : > { %v388_v50 = vadd.f32 %v387_v49, %v201_v4  ;;  %985 = vmatprep.mubr.f32.mxu1 %v408_v45  ;;  %v580_v45 = vrot.slane %v1298_v3, %v579_v44 }
 0x104   : > { %986 = vmatmul.mubr.f32.gmra.mrb[12].mxu1 %v409_v47  ;;  %v411_v52 = vmax.f32 %v393_v48, 0.0 }
 0x105   : > { %v410_v51 = vmax.f32 %v388_v50, 0.0 }
 0x107   : > { %988 = vmatprep.mubr.f32.mxu1 %v410_v51 }
 0x108   : > { %989 = vmatmul.mubr.f32.gmra.mrb[14].mxu1 %v411_v52 }
 0x1bf   : > { %v969_v58 = vpop.f32.mrb[0].mxu1 }
 0x1c0   : > { %v488_v59 = vadd.f32 %v969_v58, %v415_v57  ;;  %v482_v60 = vpop.f32.mrb[1].mxu1 }
 0x1c1   : > { %v483_v61 = vadd.f32 %v482_v60, %v415_v57 }
 0x1c2   : > { %v562_v0 = vmax.f32 %v488_v59, 0.0 }
 0x1c3   : > { %v561_v62 = vmax.f32 %v483_v61, 0.0  ;;  %v972_v63 = vpop.f32.mrb[2].mxu1 }
 0x1c4   : > { %v498_v2 = vadd.f32 %v972_v63, %v415_v57  ;;  %v492_v4 = vpop.f32.mrb[3].mxu1 }
 0x1c5   : > { %v493_v5 = vadd.f32 %v492_v4, %v415_v57  ;;  %1023 = vmatprep.mubr.f32.mxu0 %v561_v62 }
 0x1c6   : > { %1024 = vmatmul.mubr.f32.vlgmr.msra.gmra.mrb[16].mxu0 %v562_v0  ;;  %v564_v8 = vmax.f32 %v498_v2, 0.0 }
 0x1c7   : > { %v563_v6 = vmax.f32 %v493_v5, 0.0  ;;  %v975_v7 = vpop.f32.mrb[4].mxu1 }
 0x1c8   : > { %v508_v9 = vadd.f32 %v975_v7, %v415_v57  ;;  %v502_v10 = vpop.f32.mrb[5].mxu1 }
 0x1c9   : > { %v503_v11 = vadd.f32 %v502_v10, %v415_v57  ;;  %1026 = vmatprep.mubr.f32.mxu0 %v563_v6 }
 0x1ca   : > { %1027 = vmatmul.mubr.f32.gmra.mrb[18].mxu0 %v564_v8  ;;  %v566_v14 = vmax.f32 %v508_v9, 0.0 }
 0x1cb   : > { %v565_v12 = vmax.f32 %v503_v11, 0.0  ;;  %v978_v13 = vpop.f32.mrb[6].mxu1 }
 0x1cc   : > { %v518_v15 = vadd.f32 %v978_v13, %v415_v57  ;;  %v512_v16 = vpop.f32.mrb[7].mxu1 }
 0x1cd   : > { %v513_v17 = vadd.f32 %v512_v16, %v415_v57  ;;  %1029 = vmatprep.mubr.f32.mxu0 %v565_v12 }
 0x1ce   : > { %1030 = vmatmul.mubr.f32.gmra.mrb[20].mxu0 %v566_v14  ;;  %v568_v20 = vmax.f32 %v518_v15, 0.0 }
 0x1cf   : > { %v567_v18 = vmax.f32 %v513_v17, 0.0  ;;  %v981_v19 = vpop.f32.mrb[8].mxu1 }
 0x1d0   : > { %v528_v21 = vadd.f32 %v981_v19, %v415_v57  ;;  %v522_v22 = vpop.f32.mrb[9].mxu1 }
 0x1d1   : > { %v523_v23 = vadd.f32 %v522_v22, %v415_v57  ;;  %1032 = vmatprep.mubr.f32.mxu0 %v567_v18 }
 0x1d2   : > { %1033 = vmatmul.mubr.f32.gmra.mrb[22].mxu0 %v568_v20  ;;  %v570_v26 = vmax.f32 %v528_v21, 0.0 }
 0x1d3   : > { %v569_v24 = vmax.f32 %v523_v23, 0.0  ;;  %v984_v25 = vpop.f32.mrb[10].mxu1 }
 0x1d4   : > { %v538_v27 = vadd.f32 %v984_v25, %v415_v57  ;;  %v532_v28 = vpop.f32.mrb[11].mxu1 }
 0x1d5   : > { %v533_v29 = vadd.f32 %v532_v28, %v415_v57  ;;  %1035 = vmatprep.mubr.f32.mxu0 %v569_v24 }
 0x1d6   : > { %1036 = vmatmul.mubr.f32.gmra.mrb[24].mxu0 %v570_v26  ;;  %v572_v32 = vmax.f32 %v538_v27, 0.0 }
 0x1d7   : > { %v571_v30 = vmax.f32 %v533_v29, 0.0  ;;  %v987_v31 = vpop.f32.mrb[12].mxu1 }
 0x1d8   : > { %v548_v33 = vadd.f32 %v987_v31, %v415_v57  ;;  %v542_v34 = vpop.f32.mrb[13].mxu1 }
 0x1d9   : > { %v543_v35 = vadd.f32 %v542_v34, %v415_v57  ;;  %1038 = vmatprep.mubr.f32.mxu0 %v571_v30 }
 0x1da   : > { %1039 = vmatmul.mubr.f32.gmra.mrb[26].mxu0 %v572_v32  ;;  %v574_v38 = vmax.f32 %v548_v33, 0.0 }
 0x1db   : > { %v573_v36 = vmax.f32 %v543_v35, 0.0  ;;  %v990_v37 = vpop.f32.mrb[14].mxu1 }
 0x1dc   : > { %v558_v39 = vadd.f32 %v990_v37, %v415_v57  ;;  %v552_v40 = vpop.f32.mrb[15].mxu1 }
 0x1dd   : > { %v553_v41 = vadd.f32 %v552_v40, %v415_v57  ;;  %1041 = vmatprep.mubr.f32.mxu0 %v573_v36 }
 0x1de   : > { %1042 = vmatmul.mubr.f32.gmra.mrb[28].mxu0 %v574_v38  ;;  %v576_v43 = vmax.f32 %v558_v39, 0.0 }
 0x1df   : > { %v575_v42 = vmax.f32 %v553_v41, 0.0 }
 0x1e1   : > { %1044 = vmatprep.mubr.f32.mxu0 %v575_v42 }
 0x1e2   : > { %1045 = vmatmul.mubr.f32.gmra.mrb[30].mxu0 %v576_v43 }
 0x299   : > { %v1025_v46 = vpop.f32.mrb[16].mxu0 }
 0x29a   : > { %v653_v47 = vadd.f32 %v1025_v46, %v580_v45  ;;  %v647_v48 = vpop.f32.mrb[17].mxu0 }
 0x29b   : > { %v648_v49 = vadd.f32 %v647_v48, %v580_v45 }
 0x29c   : > { %727 = vst [vmem:[%s1316_s11 + $0x8] sm:$0xff] %v653_v47 }
 0x29d   : > { %726 = vst [vmem:[%s1316_s11] sm:$0xff] %v648_v49  ;;  %v1028_v1 = vpop.f32.mrb[18].mxu0 }
 0x29e   : > { %v663_v3 = vadd.f32 %v1028_v1, %v580_v45  ;;  %v657_v50 = vpop.f32.mrb[19].mxu0 }
 0x29f   : > { %v658_v51 = vadd.f32 %v657_v50, %v580_v45 }
 0x2a0   : > { %729 = vst [vmem:[%s1316_s11 + $0x18] sm:$0xff] %v663_v3 }
 0x2a1   : > { %728 = vst [vmem:[%s1316_s11 + $0x10] sm:$0xff] %v658_v51  ;;  %v1031_v52 = vpop.f32.mrb[20].mxu0 }
 0x2a2   : > { %v673_v53 = vadd.f32 %v1031_v52, %v580_v45  ;;  %v667_v54 = vpop.f32.mrb[21].mxu0 }
 0x2a3   : > { %v668_v55 = vadd.f32 %v667_v54, %v580_v45 }
 0x2a4   : > { %731 = vst [vmem:[%s1316_s11 + $0x28] sm:$0xff] %v673_v53 }
 0x2a5   : > { %730 = vst [vmem:[%s1316_s11 + $0x20] sm:$0xff] %v668_v55  ;;  %v1034_v56 = vpop.f32.mrb[22].mxu0 }
 0x2a6   : > { %v683_v57 = vadd.f32 %v1034_v56, %v580_v45  ;;  %v677_v58 = vpop.f32.mrb[23].mxu0 }
 0x2a7   : > { %v678_v59 = vadd.f32 %v677_v58, %v580_v45 }
 0x2a8   : > { %733 = vst [vmem:[%s1316_s11 + $0x38] sm:$0xff] %v683_v57 }
 0x2a9   : > { %732 = vst [vmem:[%s1316_s11 + $0x30] sm:$0xff] %v678_v59  ;;  %v1037_v60 = vpop.f32.mrb[24].mxu0 }
 0x2aa   : > { %v693_v61 = vadd.f32 %v1037_v60, %v580_v45  ;;  %v687_v62 = vpop.f32.mrb[25].mxu0 }
 0x2ab   : > { %v688_v63 = vadd.f32 %v687_v62, %v580_v45 }
 0x2ac   : > { %735 = vst [vmem:[%s1316_s11 + $0x48] sm:$0xff] %v693_v61 }
 0x2ad   : > { %734 = vst [vmem:[%s1316_s11 + $0x40] sm:$0xff] %v688_v63  ;;  %v1040_v0 = vpop.f32.mrb[26].mxu0 }
 0x2ae   : > { %v703_v2 = vadd.f32 %v1040_v0, %v580_v45  ;;  %v697_v4 = vpop.f32.mrb[27].mxu0 }
 0x2af   : > { %v698_v5 = vadd.f32 %v697_v4, %v580_v45 }
 0x2b0   : > { %737 = vst [vmem:[%s1316_s11 + $0x58] sm:$0xff] %v703_v2 }
 0x2b1   : > { %736 = vst [vmem:[%s1316_s11 + $0x50] sm:$0xff] %v698_v5  ;;  %v1043_v6 = vpop.f32.mrb[28].mxu0 }
 0x2b2   : > { %v713_v7 = vadd.f32 %v1043_v6, %v580_v45  ;;  %v707_v8 = vpop.f32.mrb[29].mxu0 }
 0x2b3   : > { %v708_v9 = vadd.f32 %v707_v8, %v580_v45 }
 0x2b4   : > { %739 = vst [vmem:[%s1316_s11 + $0x68] sm:$0xff] %v713_v7 }
 0x2b5   : > { %738 = vst [vmem:[%s1316_s11 + $0x60] sm:$0xff] %v708_v9  ;;  %v1046_v10 = vpop.f32.mrb[30].mxu0 }
 0x2b6   : > { %v723_v11 = vadd.f32 %v1046_v10, %v580_v45  ;;  %v717_v12 = vpop.f32.mrb[31].mxu0 }
 0x2b7   : > { %v718_v13 = vadd.f32 %v717_v12, %v580_v45 }
 0x2b8   : > { %741 = vst [vmem:[%s1316_s11 + $0x78] sm:$0xff] %v723_v11 }
 0x2b9   : > { %740 = vst [vmem:[%s1316_s11 + $0x70] sm:$0xff] %v718_v13 }
 0x2ba PF: > { %s12_s9 = sadd.s32 1, %s1129_s9  }
 0x2bb   : > { %p9_p4 = scmp.ge.s32.totalorder %s12_s9, 4  }
 0x2bd   :  { %11 = sbr.rel (!%p9_p4) target bundleno = 1 (0x1), region = 58 }

</bundles_post_ra>
